<compile_context>
chip_gen: v6e
topology: v6e:2x2x1
jax: 0.10.0
libtpu: 0.0.40
codegen_flags: <defaults>
</compile_context>

<pallas_src>
import math

import jax
import jax.numpy as jnp
import numpy as np
from jax.experimental import pallas as pl
from jax.experimental.pallas import tpu as pltpu


def _drop_path_kernel(x_ref, scale_ref, o_ref):
    # (TB, ND) * (TB, 1): per-row scale broadcast across lanes, pure VPU work.
    o_ref[...] = x_ref[...] * scale_ref[...]


def _pick_batch_tile(batch: int, row_bytes: int,
                     target_bytes: int = 2 * 1024 * 1024) -> int:
    """Rows per grid step: whole batch if it is small, otherwise a multiple of
    8 sized so one block is ~2 MiB (keeps 2x-in + 2x-out pipeline buffers far
    under the VMEM scoped limit on v5e / v6e / v7x)."""
    if batch * row_bytes <= target_bytes:
        return batch
    tb = max(1, target_bytes // max(row_bytes, 1))
    tb = max(8, (tb // 8) * 8)  # second-to-last block dim must be 8-aligned
    return min(tb, max(8, batch))


def drop_path(x: jax.Array,
              drop_prob: float,
              seed: int,
              *,
              scale_by_keep: bool = True,
              training: bool = True) -> jax.Array:
    """Pallas DropPath. x: (B, ...) — per-sample stochastic depth."""
    if drop_prob <= 0.0 or not training:
        return x
    keep_prob = 1.0 - drop_prob

    batch = x.shape[0]
    nd = int(math.prod(x.shape[1:]))
    # Lane-dense layout: one row per sample, all features along the lane axis.
    x2 = x.reshape(batch, nd)

    # Per-sample Bernoulli mask + 1/keep_prob scaling computed in the wrapper
    # (B scalar draws); the kernel only does the fused multiply.
    key = jax.random.PRNGKey(seed) if isinstance(seed, int) else seed
    keep = jax.random.bernoulli(key, p=keep_prob, shape=(batch,)).astype(jnp.float32)
    if scale_by_keep and keep_prob > 0.0:
        scale = keep / jnp.float32(keep_prob)
    else:
        scale = keep
    scale = scale.astype(x.dtype).reshape(batch, 1)

    tb = _pick_batch_tile(batch, nd * x.dtype.itemsize)
    grid = (pl.cdiv(batch, tb),)

    # NOTE: if N*D is not a multiple of 128, stores on the last (partial) lane
    # group are masked; padding here would cost an extra HBM pass, so we keep
    # the full-extent last dim (always a legal block shape).
    out2 = pl.pallas_call(
        _drop_path_kernel,
        grid=grid,
        in_specs=[
            pl.BlockSpec((tb, nd), lambda i: (i, 0)),
            pl.BlockSpec((tb, 1), lambda i: (i, 0)),
        ],
        out_specs=pl.BlockSpec((tb, nd), lambda i: (i, 0)),
        out_shape=jax.ShapeDtypeStruct((batch, nd), x.dtype),
        input_output_aliases={0: 0},  # write in place when the input is donatable
        compiler_params=pltpu.CompilerParams(
            dimension_semantics=("parallel",)),  # shards batch tiles across v7x TCs
    )(x2, scale)

    return out2.reshape(x.shape)


if __name__ == "__main__":
    key = jax.random.PRNGKey(0)
    B, N, D = 2, 8, 32  # ST-MEM residual-branch activation: (batch, tokens, hidden)
    x = jax.random.normal(key, (B, N, D), dtype=jnp.float32)
    x_np = np.asarray(x)  # host snapshot (independent of device buffers)

    drop_prob = 0.3
    keep_prob = 1.0 - drop_prob
    out = drop_path(x, drop_prob, seed=0, scale_by_keep=True, training=True)
    out = np.asarray(jax.block_until_ready(out))

    # Sanity: each sample is either zeroed or scaled by exactly 1/keep_prob.
    for b in range(B):
        zeroed = bool(np.all(out[b] == 0.0))
        scaled = bool(np.allclose(out[b], x_np[b] / keep_prob, rtol=1e-5, atol=1e-6))
        assert zeroed or scaled, "per-sample mask semantics violated"

    # Eval mode and drop_prob <= 0 return the input unchanged.
    same = drop_path(x, drop_prob, seed=0, training=False)
    assert bool(np.array_equal(np.asarray(same), x_np))
    same2 = drop_path(x, 0.0, seed=0, training=True)
    assert bool(np.array_equal(np.asarray(same2), x_np))

    print("KERNEL_OK")
</pallas_src>

<mosaic_0001>
module attributes {stable_mosaic.version = 11 : i64} {
  func.func @_drop_path_kernel(%arg0: i32, %arg1: memref<2x256xf32, #tpu.memory_space<vmem>>, %arg2: memref<2x1xf32, #tpu.memory_space<vmem>>, %arg3: memref<2x256xf32, #tpu.memory_space<vmem>>) attributes {dimension_semantics = [#tpu.dimension_semantics<parallel>], iteration_bounds = array<i64: 1>, scalar_prefetch = 0 : i64, scratch_operands = 0 : i64, tpu.core_type = #tpu.core_type<tc>, window_params = [{transform_indices = @transform_0, window_bounds = array<i64: 2, 256>}, {transform_indices = @transform_1, window_bounds = array<i64: 2, 1>}, {transform_indices = @transform_2, window_bounds = array<i64: 2, 256>}]} {
    %c0 = arith.constant 0 : index
    %c0_0 = arith.constant 0 : index
    %0 = vector.load %arg1[%c0, %c0_0] : memref<2x256xf32, #tpu.memory_space<vmem>>, vector<2x256xf32>
    %c0_1 = arith.constant 0 : index
    %c0_2 = arith.constant 0 : index
    %1 = vector.load %arg2[%c0_1, %c0_2] : memref<2x1xf32, #tpu.memory_space<vmem>>, vector<2x1xf32>
    %2 = vector.broadcast %1 : vector<2x1xf32> to vector<2x256xf32>
    %3 = arith.mulf %0, %2 : vector<2x256xf32>
    %c0_3 = arith.constant 0 : index
    %c0_4 = arith.constant 0 : index
    %4 = vector.load %arg3[%c0_3, %c0_4] : memref<2x256xf32, #tpu.memory_space<vmem>>, vector<2x256xf32>
    tpu.vector_store %arg3[%c0_3, %c0_4], %3 {strides = array<i32>} : memref<2x256xf32, #tpu.memory_space<vmem>>, vector<2x256xf32>,
    return
  }
  func.func @transform_0(%arg0: i32) -> (i32, i32) {
    %c0_i32 = arith.constant 0 : i32
    %c0_i32_0 = arith.constant 0 : i32
    return %arg0, %c0_i32 : i32, i32
  }
  func.func @transform_1(%arg0: i32) -> (i32, i32) {
    %c0_i32 = arith.constant 0 : i32
    %c0_i32_0 = arith.constant 0 : i32
    return %arg0, %c0_i32 : i32, i32
  }
  func.func @transform_2(%arg0: i32) -> (i32, i32) {
    %c0_i32 = arith.constant 0 : i32
    %c0_i32_0 = arith.constant 0 : i32
    return %arg0, %c0_i32 : i32, i32
  }
}

</mosaic_0001>

<bundles_post_ra>
// kernel: tpu_custom_call.1
= control target key start
LH: loop header
LB: loop body
LE: loop exit
PB: predicated region body
PF: predicated region fallthrough
CT: control target
= control target key end

     0   :  { %7 = vsyncpa [#allocation3], 0  ;;  %s132_s0 = inlined_call_operand.hbm [shape: f32[2,256], index: 0, kind: input, shape index: {}, may-alias: {0,2}]   ;;  %s133_s1 = inlined_call_operand.vmem [shape: f32[2,1], index: 1, kind: input, shape index: {}]   ;;  %s134_s2 = inlined_call_operand.hbm [shape: f32[2,256], index: 2, kind: output, shape index: {}, may-alias: {0,2}]  }
   0x1   :  { %8 = vsyncpa [#allocation4], 0  ;;  %s104_s9 = smov [#allocation2]  }
   0x2   :  { %s15_s10 = sshll.u32 %s104_s9, 4  ;;  %s16_s10 = int_to_ptr.vmem [resolvable:$true] %s15_s10 }
   0x3   :  { %s68_s11 = scalar_lea.vmem %s16_s10, 64  ;;  %p73_p1 = scmp.lt.s32.totalorder %s16_s10, %s16_s10 }
   0x4   :  { %p69_p0 = scmp.ne.s32.totalorder %s16_s10, %s68_s11  ;;  %p74_p2 = scmp.lt.s32.totalorder %s68_s11, %s68_s11 }
   0x6   :  { %p75_p3 = por %p74_p2, %p73_p1 }
   0x8   :  { %p76_p4 = pnand %p75_p3, %p69_p0 }
   0xa   :  { %79 = shalt.err (!%p76_p4)
}
   0xb   :  { %18 = dma.hbm_to_vmem [thread:$0]  %s132_s0, 64, %s16_s10, [#allocation3]  }
   0xc   :  { %100 = dma.done.wait [#allocation3], 64  }
   0xd   :  { %101 = vsyncadd [#allocation3], 4294967232  ;;  %v105_v0 = vmov 0   ;;  %v25_v1 = vld [vmem:[%s133_s1] sm:$0x3]  ;;  %v33_v4 = vlaneseq  ;;  %s107_s16 = smov [#allocation5]  }
   0xe   :  { %59 = vset.pattern.permute.xlu0 %v105_v0  ;;  %v106_v2 = vmov 269488144   ;;  %v24_v9 = vld [vmem:[#allocation2] sm:$0xf]  ;;  %s46_s17 = sshll.u32 %s107_s16, 4  ;;  %s47_s17 = int_to_ptr.vmem [resolvable:$true] %s46_s17 }
   0xf   :  { %28 = vperm.xlu0 %59, %v25_v1   ;;  %v31_v3 = vunpack.c.l.s4 %v106_v2  ;;  %v34_v6 = vshrl.u32 %v33_v4, 7  ;;  %s80_s0 = scalar_lea.vmem %s47_s17, 64  ;;  %p85_p6 = scmp.lt.s32.totalorder %s47_s17, %s47_s17 }
  0x10   :  { %p81_p5 = scmp.ne.s32.totalorder %s47_s17, %s80_s0  ;;  %p86_p7 = scmp.lt.s32.totalorder %s80_s0, %s80_s0 }
  0x11   :  { %v32_v5 = vunpack.c.0.s8 %v31_v3 }
  0x12   :  { %p87_p8 = por %p86_p7, %p85_p6 }
  0x13   :  { %v35_v7 = vsub.s32 %v32_v5, %v34_v6 }
  0x14   :  { %p88_p9 = pnand %p87_p8, %p81_p5 }
  0x8a   :  { %v29_v8 = vpop.permute.xlu0 %28 }
  0x8b   :  { %v36_v10 = vrot.slane %v29_v8, %v35_v7 }
  0x8d   :  { %v38_v11 = vmul.f32 %v36_v10, %v24_v9 }
  0x8f   :  { %39 = vst [vmem:[#allocation5] sm:$0xf] %v38_v11 }
  0x90   :  { %91 = shalt.err (!%p88_p9)
}
  0x91   :  { %49 = dma.vmem_to_hbm [thread:$0]  %s47_s17, 64, %s134_s2, [#allocation4]  }
  0x92   :  { %102 = dma.done.wait [#allocation4], 64  }
  0x93   :  { %103 = vsyncadd [#allocation4], 4294967232 }
  0x94   :  { %53 = vsyncpa [#allocation3], 1 }
  0x95   :  { %54 = vsyncpa [#allocation4], 1 }

</bundles_post_ra>
